<compile_context>
chip_gen: v7x
topology: tpu7x:2x2x1
jax: 0.10.0
libtpu: 0.0.40
codegen_flags: <defaults>
</compile_context>

<pallas_src>
import functools

import jax
import jax.numpy as jnp
from jax import lax
from jax.experimental import pallas as pl
from jax.experimental.pallas import tpu as pltpu


def _round_up(x, m):
    return ((x + m - 1) // m) * m


# ----------------------------------------------------------------------------
# Fused matmul + bias + activation Pallas kernels
# ----------------------------------------------------------------------------
def _mm_bias_act_kernel(a_ref, w_ref, b_ref, o_ref, *, activation):
    """Single-pass act(A @ W + b) -- used when the whole K fits in one block."""
    out = jnp.dot(a_ref[...], w_ref[...],
                  preferred_element_type=jnp.float32) + b_ref[...]
    if activation == "relu":
        out = jnp.maximum(out, 0.0)
    elif activation == "tanh":
        out = jnp.tanh(out)
    o_ref[...] = out.astype(o_ref.dtype)


def _mm_bias_act_kacc_kernel(a_ref, w_ref, b_ref, o_ref, *, activation):
    """K-tiled act(A @ W + b); accumulates directly into the f32 output block."""
    k = pl.program_id(2)

    @pl.when(k == 0)
    def _():
        o_ref[...] = jnp.zeros_like(o_ref)

    o_ref[...] += jnp.dot(a_ref[...], w_ref[...],
                          preferred_element_type=jnp.float32)

    @pl.when(k == pl.num_programs(2) - 1)
    def _():
        out = o_ref[...] + b_ref[...]          # bias broadcasts over rows
        if activation == "relu":
            out = jnp.maximum(out, 0.0)
        elif activation == "tanh":
            out = jnp.tanh(out)
        o_ref[...] = out


def fused_matmul_bias_act(a, w, b, activation="none"):
    """act(a @ w + b) via a tiled Pallas TPU kernel.

    a: [M, K] f32, w: [K, N] f32, b: [N] f32.  Weights are expected to be
    pre-laid-out (see prepare_decoder_params); no weight padding happens here.
    """
    M, K = a.shape
    K2, N = w.shape
    assert K == K2 and b.shape == (N,)

    # Row tile: 128 when it divides M, otherwise a full-extent block (legal
    # because block dim == array dim), otherwise pad.
    if M >= 128 and M % 128 == 0:
        tm, Mp = 128, M
    elif M <= 128:
        tm, Mp = M, M
    else:
        tm, Mp = 128, _round_up(M, 128)

    # Reduction tile: full-extent K (single pass, no K grid axis) when small,
    # large chunks for the weight-streaming linear layer.
    if K <= 2048:
        tk, Kp = K, K
    else:
        tk = 4096
        Kp = _round_up(K, tk)

    # Column tile: lane-dense 128 when possible, else full-extent.
    tn = 128 if N % 128 == 0 else N
    Np = N

    a_p = a if (Mp == M and Kp == K) else (
        jnp.zeros((Mp, Kp), a.dtype).at[:M, :K].set(a))
    w_p = w if Kp == K else jnp.zeros((Kp, Np), w.dtype).at[:K, :].set(w)
    b2 = b.reshape(1, N)

    nk = Kp // tk

    if nk == 1:
        grid = (Mp // tm, Np // tn)
        in_specs = [
            pl.BlockSpec((tm, tk), lambda i, j: (i, 0)),
            pl.BlockSpec((tk, tn), lambda i, j: (0, j)),
            pl.BlockSpec((1, tn), lambda i, j: (0, j)),
        ]
        out_spec = pl.BlockSpec((tm, tn), lambda i, j: (i, j))
        kernel = functools.partial(_mm_bias_act_kernel, activation=activation)
        dims = ("parallel", "parallel")
    else:
        grid = (Mp // tm, Np // tn, nk)
        in_specs = [
            pl.BlockSpec((tm, tk), lambda i, j, k: (i, k)),
            pl.BlockSpec((tk, tn), lambda i, j, k: (k, j)),
            pl.BlockSpec((1, tn), lambda i, j, k: (0, j)),
        ]
        out_spec = pl.BlockSpec((tm, tn), lambda i, j, k: (i, j))
        kernel = functools.partial(_mm_bias_act_kacc_kernel,
                                   activation=activation)
        dims = ("parallel", "parallel", "arbitrary")

    out = pl.pallas_call(
        kernel,
        out_shape=jax.ShapeDtypeStruct((Mp, Np), jnp.float32),
        grid_spec=pltpu.PrefetchScalarGridSpec(
            num_scalar_prefetch=0,
            grid=grid,
            in_specs=in_specs,
            out_specs=out_spec,
        ),
        compiler_params=pltpu.CompilerParams(
            dimension_semantics=dims,
            # Largest working set is the linear layer (~4.1 MiB double
            # buffered); 32 MiB is safe on v5e/v6e/v7x and documents headroom.
            vmem_limit_bytes=32 * 1024 * 1024),
    )(a_p, w_p, b2)
    return out if Mp == M else out[:M]


# ----------------------------------------------------------------------------
# im2col glue (plain JAX, NHWC) — lane-dense channel slices
# ----------------------------------------------------------------------------
def im2col_nhwc(x, kh, kw, stride, pad):
    # x: [B, H, W, C]; patch column order = (ki, kj, c), matching a
    # (kh, kw, C, O)-flattened conv weight.
    x = jnp.pad(x, ((0, 0), (pad, pad), (pad, pad), (0, 0)))
    B, H, W, C = x.shape
    oh = (H - kh) // stride + 1
    ow = (W - kw) // stride + 1
    cols = []
    for i in range(kh):
        for j in range(kw):
            cols.append(x[:, i:i + stride * oh:stride,
                             j:j + stride * ow:stride, :])
    p = jnp.stack(cols, axis=3)                     # [B, oh, ow, kh*kw, C]
    p = p.reshape(B * oh * ow, kh * kw * C)
    return p, oh, ow


# ----------------------------------------------------------------------------
# Decoder parameters (torch layout) + one-time kernel-layout prep
# ----------------------------------------------------------------------------
def init_decoder_params(key, nz=100):
    keys = jax.random.split(key, 6)

    def u(k, shape, fan_in):
        bound = 1.0 / float(fan_in) ** 0.5
        return jax.random.uniform(k, shape, jnp.float32, -bound, bound)

    return dict(
        w1=u(keys[0], (64, 3, 4, 4), 3 * 4 * 4),
        b1=u(keys[1], (64,), 3 * 4 * 4),
        w2=u(keys[2], (128, 64, 4, 4), 64 * 4 * 4),
        b2=u(keys[3], (128,), 64 * 4 * 4),
        wl=u(keys[4], (nz, 128 * 16 * 16), 128 * 16 * 16),
        bl=u(keys[5], (nz,), 128 * 16 * 16),
    )


def prepare_decoder_params(params):
    """One-time re-layout of the torch-style params for the Pallas kernels."""
    nz = params["wl"].shape[0]
    # Conv weights: OIHW -> (kh, kw, C, O) -> [kh*kw*C, O] (matches NHWC im2col).
    w1 = params["w1"].transpose(2, 3, 1, 0).reshape(3 * 4 * 4, 64)
    w2 = params["w2"].transpose(2, 3, 1, 0).reshape(64 * 4 * 4, 128)
    # Linear weight: fold the NCHW-flatten permutation into the columns so the
    # kernel consumes the NHWC activation directly; pad N (=nz) to 128 lanes.
    wl = params["wl"].reshape(nz, 128, 16, 16).transpose(2, 3, 1, 0)
    wl = wl.reshape(16 * 16 * 128, nz)
    n_pad = _round_up(nz, 128)
    wl_p = jnp.zeros((wl.shape[0], n_pad), jnp.float32).at[:, :nz].set(wl)
    bl_p = jnp.zeros((n_pad,), jnp.float32).at[:nz].set(params["bl"])
    return dict(w1=w1, b1=params["b1"], w2=w2, b2=params["b2"],
                wl=wl_p, bl=bl_p)


# ----------------------------------------------------------------------------
# Decoder forward pass (hot path in Pallas, NHWC-internal)
# ----------------------------------------------------------------------------
def decoder_forward(prepped, x, nz):
    # x is NCHW [B, 3, 64, 64] float32, identical to the PyTorch module.
    B = x.shape[0]
    xh = jnp.transpose(x, (0, 2, 3, 1))                           # NHWC (tiny)

    # Conv2d(3, 64, 4, 2, 1) + ReLU        (single-K-pass kernel, K=48)
    p1, oh1, ow1 = im2col_nhwc(xh, 4, 4, 2, 1)                    # [B*32*32, 48]
    y1 = fused_matmul_bias_act(p1, prepped["w1"], prepped["b1"], "relu")
    y1 = y1.reshape(B, oh1, ow1, 64)                              # NHWC

    # Conv2d(64, 128, 4, 2, 1) + ReLU      (single-K-pass kernel, K=1024)
    p2, oh2, ow2 = im2col_nhwc(y1, 4, 4, 2, 1)                    # [B*16*16, 1024]
    y2 = fused_matmul_bias_act(p2, prepped["w2"], prepped["b2"], "relu")

    # Flatten (NHWC order; permutation already folded into wl) + Linear + Tanh
    flat = y2.reshape(B, oh2 * ow2 * 128)                         # [B, 32768]
    out = fused_matmul_bias_act(flat, prepped["wl"], prepped["bl"], "tanh")
    return out[:, :nz]                                            # [B, nz]


# ----------------------------------------------------------------------------
# Pure-JAX reference for correctness checking (torch-layout params)
# ----------------------------------------------------------------------------
def decoder_reference(params, x):
    dn = ("NCHW", "OIHW", "NCHW")
    y = lax.conv_general_dilated(x, params["w1"], (2, 2), [(1, 1), (1, 1)],
                                 dimension_numbers=dn)
    y = jnp.maximum(y + params["b1"][None, :, None, None], 0.0)
    y = lax.conv_general_dilated(y, params["w2"], (2, 2), [(1, 1), (1, 1)],
                                 dimension_numbers=dn)
    y = jnp.maximum(y + params["b2"][None, :, None, None], 0.0)
    flat = y.reshape(x.shape[0], -1)
    return jnp.tanh(flat @ params["wl"].T + params["bl"])


if __name__ == "__main__":
    key = jax.random.PRNGKey(0)
    k_param, k_x = jax.random.split(key)

    nz = 100
    params = init_decoder_params(k_param, nz=nz)
    prepped = prepare_decoder_params(params)      # one-time weight re-layout

    # The Linear(128*16*16, nz) layer pins the spatial size to 64x64.
    x = jax.random.normal(k_x, (2, 3, 64, 64), jnp.float32)

    out = jax.block_until_ready(decoder_forward(prepped, x, nz))
    ref = jax.block_until_ready(decoder_reference(params, x))

    assert out.shape == (2, nz), out.shape
    assert jnp.allclose(out, ref, atol=1e-4, rtol=1e-4), (
        float(jnp.max(jnp.abs(out - ref))))

    print("KERNEL_OK")
</pallas_src>

<mosaic_0001>
module attributes {stable_mosaic.version = 11 : i64} {
  func.func @_mm_bias_act_kernel(%arg0: i32, %arg1: i32, %arg2: memref<128x48xf32, #tpu.memory_space<vmem>>, %arg3: memref<48x64xf32, #tpu.memory_space<vmem>>, %arg4: memref<1x64xf32, #tpu.memory_space<vmem>>, %arg5: memref<128x64xf32, #tpu.memory_space<vmem>>) attributes {dimension_semantics = [#tpu.dimension_semantics<parallel>, #tpu.dimension_semantics<parallel>], iteration_bounds = array<i64: 16, 1>, scalar_prefetch = 0 : i64, scratch_operands = 0 : i64, tpu.core_type = #tpu.core_type<tc>, window_params = [{transform_indices = @transform_0, window_bounds = array<i64: 128, 48>}, {transform_indices = @transform_1, window_bounds = array<i64: 48, 64>}, {transform_indices = @transform_2, window_bounds = array<i64: 1, 64>}, {transform_indices = @transform_3, window_bounds = array<i64: 128, 64>}]} {
    %c0 = arith.constant 0 : index
    %c0_0 = arith.constant 0 : index
    %0 = vector.load %arg2[%c0, %c0_0] : memref<128x48xf32, #tpu.memory_space<vmem>>, vector<128x48xf32>
    %c0_1 = arith.constant 0 : index
    %c0_2 = arith.constant 0 : index
    %1 = vector.load %arg3[%c0_1, %c0_2] : memref<48x64xf32, #tpu.memory_space<vmem>>, vector<48x64xf32>
    %cst = arith.constant dense<0.000000e+00> : vector<128x64xf32>
    %2 = tpu.matmul %0, %1, %cst {dimension_numbers = #tpu.dot_dimension_numbers<[1], [0], [0], [1], [0, 0, 1, 1], [], []>} : vector<128x48xf32>, vector<48x64xf32>, vector<128x64xf32> -> vector<128x64xf32>
    %c0_3 = arith.constant 0 : index
    %c0_4 = arith.constant 0 : index
    %3 = vector.load %arg4[%c0_3, %c0_4] : memref<1x64xf32, #tpu.memory_space<vmem>>, vector<1x64xf32>
    %4 = vector.broadcast %3 : vector<1x64xf32> to vector<128x64xf32>
    %5 = arith.addf %2, %4 : vector<128x64xf32>
    %cst_5 = arith.constant 0.000000e+00 : f32
    %6 = vector.broadcast %cst_5 : f32 to vector<128x64xf32>
    %7 = arith.maximumf %5, %6 : vector<128x64xf32>
    %c0_6 = arith.constant 0 : index
    %c0_7 = arith.constant 0 : index
    %8 = vector.load %arg5[%c0_6, %c0_7] : memref<128x64xf32, #tpu.memory_space<vmem>>, vector<128x64xf32>
    tpu.vector_store %arg5[%c0_6, %c0_7], %7 {strides = array<i32>} : memref<128x64xf32, #tpu.memory_space<vmem>>, vector<128x64xf32>,
    return
  }
  func.func @transform_0(%arg0: i32, %arg1: i32) -> (i32, i32) {
    %c0_i32 = arith.constant 0 : i32
    %c0_i32_0 = arith.constant 0 : i32
    return %arg0, %c0_i32 : i32, i32
  }
  func.func @transform_1(%arg0: i32, %arg1: i32) -> (i32, i32) {
    %c0_i32 = arith.constant 0 : i32
    %c0_i32_0 = arith.constant 0 : i32
    return %c0_i32, %arg1 : i32, i32
  }
  func.func @transform_2(%arg0: i32, %arg1: i32) -> (i32, i32) {
    %c0_i32 = arith.constant 0 : i32
    %c0_i32_0 = arith.constant 0 : i32
    return %c0_i32, %arg1 : i32, i32
  }
  func.func @transform_3(%arg0: i32, %arg1: i32) -> (i32, i32) {
    %c0_i32 = arith.constant 0 : i32
    return %arg0, %arg1 : i32, i32
  }
}

</mosaic_0001>

<bundles_post_ra>
// kernel: tpu_custom_call.1
= control target key start
LH: loop header
LB: loop body
LE: loop exit
PB: predicated region body
PF: predicated region fallthrough
CT: control target
= control target key end

     0   :  { %s757_s12 = smov 0   ;;  %s759_s13 = smov 0   ;;  %s886_s0 = inlined_call_operand.vmem [shape: f32[2048,48], index: 0, kind: input, shape index: {}]   ;;  %s887_s1 = inlined_call_operand.vmem [shape: f32[48,64], index: 1, kind: input, shape index: {}]   ;;  %s888_s2 = inlined_call_operand.vmem [shape: f32[1,64], index: 2, kind: input, shape index: {}]   ;;  %s889_s3 = inlined_call_operand.vmem [shape: f32[2048,64], index: 3, kind: output, shape index: {}]  }
   0x1   :  { %s761_s14 = smov 0  }
   0x2 LB: > { %s25_s15 = sadd.s32 1, %s731_s13  ;;  %p589_p0 = scmp.ge.s32.totalorder %s735_s14, 1  ;;  %s735_s14 = sphi %s761_s14, %s13_s14   ;;  %s731_s13 = sphi %s759_s13, %s891_s13   ;;  %s727_s12 = sphi %s757_s12, %s890_s12  }
   0x3   : > { %p27_p1 = scmp.ge.s32.totalorder %s25_s15, 16  ;;  %p169_p2 = scmp.lt.s32.totalorder %s735_s14, 17 }
   0x5   : > { %s893_s15 = smov (%p27_p1, %s25_s15), 0  ;;  %p170_p3 = pnand %p589_p0, %p169_p2 }
   0x6   : > { %v241_v0 = vld [vmem:[%s887_s1] sm:$0xff] (!%p170_p3)  ;;  %v242_v1 = vld [vmem:[%s887_s1 + $0x8] sm:$0xff] (!%p170_p3)  ;;  %v243_v2 = vld [vmem:[%s887_s1 + $0x10] sm:$0xff] (!%p170_p3)  ;;  %s590_s22 = sshll.u32 (!%p170_p3), %s727_s12, 4  ;;  %vm254_vm0 = vcmask (!%p170_p3), 392192   ;;  %vm464_vm1 = vcmask (!%p170_p3), 523264  }
   0x7   : > { %173 = sbr.rel (%p170_p3) target bundleno = 252 (0xfc), region = 32  ;;  %v671_v3 = vpack.c.bf16 (!%p170_p3), %v242_v1, %v241_v0  ;;  %v244_v4 = vld [vmem:[%s887_s1 + $0x18] sm:$0xff] (!%p170_p3)  ;;  %p204_p4 = scmp.lt.s32.totalorder (!%p170_p3), %s590_s22, 255  ;;  %v245_v6 = vld [vmem:[%s887_s1 + $0x20] sm:$0xff] (!%p170_p3)  ;;  %v246_v7 = vld [vmem:[%s887_s1 + $0x28] sm:$0xff] (!%p170_p3) }
   0x8   : > { %v675_v5 = vpack.c.bf16 (!%p170_p3), %v244_v4, %v243_v2  ;;  %v679_v8 = vpack.c.bf16 (!%p170_p3), %v246_v7, %v245_v6  ;;  %v594_v25 = vld [vmem:[%s888_s2] ss:$0 sm:$0xff] (!%p170_p3) }
   0x9   : > { %672 = vmatprep.subr.bf16.mxu0 (!%p170_p3), %v671_v3  ;;  %683 = vmatprep.subr.bf16.mxu1 (!%p170_p3), %v671_v3 }
   0xa   : > { %674 = vmatpush3.bf16.msra.mxu0 (!%p170_p3), %v671_v3  ;;  %686 = vmatpush3.bf16.msra.mxu1 (!%p170_p3), %v671_v3 }
   0xb   : > { %676 = vmatprep.subr.bf16.mxu0 (!%p170_p3), %v675_v5  ;;  %684 = vmatprep.subr.bf16.mxu1 (!%p170_p3), %v675_v5 }
   0xe   : > { %s895_s22 = smov (!%p204_p4, %s590_s22), 255  ;;  %678 = vmatpush3.bf16.msra.mxu0 %v675_v5  ;;  %687 = vmatpush3.bf16.msra.mxu1 %v675_v5 }
   0xf   : > { %s591_s29 = sshll.u32 %s895_s22, 3  ;;  %680 = vmatprep.subr.bf16.mxu0 %v679_v8  ;;  %685 = vmatprep.subr.bf16.mxu1 %v679_v8 }
  0x10   : > { %s801_s5 = scalar_lea.vmem %s886_s0, %s591_s29  ;;  %s843_s10 = scalar_lea.vmem %s889_s3, %s591_s29 }
  0x11   : > { %v225_v9 = vld [vmem:[%s801_s5] sm:$0xff]  ;;  %v226_v11 = vld [vmem:[%s801_s5 + $0x8] sm:$0xff]  ;;  %v227_v13 = vld [vmem:[%s801_s5 + $0x10] sm:$0xff] }
  0x12   : > { %v233_v10 = vld [vmem:[%s801_s5 + $0x40] sm:$0xff]  ;;  %647 = vmatprep.mubr.msk.f32.mxu0 %vm254_vm0, %v225_v9  ;;  %682 = vmatpush3.bf16.msra.mxu0 %v679_v8  ;;  %v234_v12 = vld [vmem:[%s801_s5 + $0x48] sm:$0xff]  ;;  %v235_v14 = vld [vmem:[%s801_s5 + $0x50] sm:$0xff] }
  0x13   : > { %659 = vmatprep.mubr.msk.f32.mxu1 %vm254_vm0, %v233_v10  ;;  %688 = vmatpush3.bf16.msra.mxu1 %v679_v8  ;;  %v228_v15 = vld [vmem:[%s801_s5 + $0x18] sm:$0xff]  ;;  %v229_v17 = vld [vmem:[%s801_s5 + $0x20] sm:$0xff]  ;;  %v230_v19 = vld [vmem:[%s801_s5 + $0x28] sm:$0xff] }
  0x14   : > { %v236_v16 = vld [vmem:[%s801_s5 + $0x58] sm:$0xff]  ;;  %v237_v18 = vld [vmem:[%s801_s5 + $0x60] sm:$0xff]  ;;  %v238_v20 = vld [vmem:[%s801_s5 + $0x68] sm:$0xff] }
  0x15   : > { %648 = vmatmul.mubr.msk.f32.vlgmr.msra.gmra.mrb[0].mxu0 %vm254_vm0, %v226_v11  ;;  %v231_v21 = vld [vmem:[%s801_s5 + $0x30] sm:$0xff]  ;;  %v232_v23 = vld [vmem:[%s801_s5 + $0x38] sm:$0xff] }
  0x16   : > { %660 = vmatmul.mubr.msk.f32.vlgmr.msra.gmra.mrb[0].mxu1 %vm254_vm0, %v234_v12  ;;  %650 = vmatprep.mubr.msk.f32.mxu0 %vm254_vm0, %v227_v13  ;;  %v239_v22 = vld [vmem:[%s801_s5 + $0x70] sm:$0xff]  ;;  %v240_v24 = vld [vmem:[%s801_s5 + $0x78] sm:$0xff] }
  0x17   : > { %662 = vmatprep.mubr.msk.f32.mxu1 %vm254_vm0, %v235_v14 }
  0x19   : > { %651 = vmatmul.mubr.msk.f32.gmra.mrb[2].mxu0 %vm254_vm0, %v228_v15 }
  0x1a   : > { %663 = vmatmul.mubr.msk.f32.gmra.mrb[2].mxu1 %vm254_vm0, %v236_v16  ;;  %653 = vmatprep.mubr.msk.f32.mxu0 %vm254_vm0, %v229_v17 }
  0x1b   : > { %665 = vmatprep.mubr.msk.f32.mxu1 %vm254_vm0, %v237_v18 }
  0x1d   : > { %654 = vmatmul.mubr.msk.f32.gmra.mrb[4].mxu0 %vm254_vm0, %v230_v19 }
  0x1e   : > { %666 = vmatmul.mubr.msk.f32.gmra.mrb[4].mxu1 %vm254_vm0, %v238_v20  ;;  %656 = vmatprep.mubr.msk.f32.mxu0 %vm254_vm0, %v231_v21 }
  0x1f   : > { %668 = vmatprep.mubr.msk.f32.mxu1 %vm254_vm0, %v239_v22 }
  0x21   : > { %657 = vmatmul.mubr.msk.f32.gmra.mrb[6].mxu0 %vm254_vm0, %v232_v23 }
  0x22   : > { %669 = vmatmul.mubr.msk.f32.gmra.mrb[6].mxu1 %vm254_vm0, %v240_v24 }
  0xe8   : > { %v649_v26 = vpop.f32.mrb[0].mxu0 }
  0xe9   : > { %v661_v27 = vpop.f32.mrb[0].mxu1  ;;  %v375_v28 = vadd.f32 %v649_v26, %v594_v25  ;;  %v369_v30 = vpop.f32.mrb[1].mxu0 }
  0xea   : > { %v415_v29 = vadd.f32 %v661_v27, %v594_v25  ;;  %v409_v31 = vpop.f32.mrb[1].mxu1  ;;  %v370_v32 = vadd.f32 %v594_v25, %v369_v30 }
  0xeb   : > { %v410_v33 = vadd.f32 %v594_v25, %v409_v31  ;;  %v449_v34 = vmax.f32 %v375_v28, 0.0 }
  0xec   : > { %v457_v35 = vmax.f32 %v415_v29, 0.0  ;;  %v448_v36 = vmax.f32 %v370_v32, 0.0  ;;  %v652_v38 = vpop.f32.mrb[2].mxu0 }
  0xed   : > { %v456_v37 = vmax.f32 %v410_v33, 0.0  ;;  %v664_v39 = vpop.f32.mrb[2].mxu1  ;;  %466 = vst.msk [vmem:[%s843_s10 + $0x8] sm:$0xff] %vm464_vm1, %v449_v34  ;;  %v385_v40 = vadd.f32 %v652_v38, %v594_v25  ;;  %v379_v42 = vpop.f32.mrb[3].mxu0 }
  0xee   : > { %474 = vst.msk [vmem:[%s843_s10 + $0x48] sm:$0xff] %vm464_vm1, %v457_v35  ;;  %v425_v41 = vadd.f32 %v664_v39, %v594_v25  ;;  %v419_v43 = vpop.f32.mrb[3].mxu1  ;;  %465 = vst.msk [vmem:[%s843_s10] sm:$0xff] %vm464_vm1, %v448_v36  ;;  %v380_v44 = vadd.f32 %v594_v25, %v379_v42 }
  0xef   : > { %473 = vst.msk [vmem:[%s843_s10 + $0x40] sm:$0xff] %vm464_vm1, %v456_v37  ;;  %v420_v45 = vadd.f32 %v594_v25, %v419_v43  ;;  %v451_v46 = vmax.f32 %v385_v40, 0.0 }
  0xf0   : > { %v459_v47 = vmax.f32 %v425_v41, 0.0  ;;  %v450_v48 = vmax.f32 %v380_v44, 0.0  ;;  %v655_v50 = vpop.f32.mrb[4].mxu0 }
  0xf1   : > { %v458_v49 = vmax.f32 %v420_v45, 0.0  ;;  %v667_v51 = vpop.f32.mrb[4].mxu1  ;;  %468 = vst.msk [vmem:[%s843_s10 + $0x18] sm:$0xff] %vm464_vm1, %v451_v46  ;;  %v395_v52 = vadd.f32 %v655_v50, %v594_v25  ;;  %v389_v54 = vpop.f32.mrb[5].mxu0 }
  0xf2   : > { %476 = vst.msk [vmem:[%s843_s10 + $0x58] sm:$0xff] %vm464_vm1, %v459_v47  ;;  %v435_v53 = vadd.f32 %v667_v51, %v594_v25  ;;  %v429_v55 = vpop.f32.mrb[5].mxu1  ;;  %467 = vst.msk [vmem:[%s843_s10 + $0x10] sm:$0xff] %vm464_vm1, %v450_v48  ;;  %v390_v56 = vadd.f32 %v594_v25, %v389_v54 }
  0xf3   : > { %475 = vst.msk [vmem:[%s843_s10 + $0x50] sm:$0xff] %vm464_vm1, %v458_v49  ;;  %v430_v57 = vadd.f32 %v594_v25, %v429_v55  ;;  %v453_v58 = vmax.f32 %v395_v52, 0.0 }
  0xf4   : > { %v461_v59 = vmax.f32 %v435_v53, 0.0  ;;  %v452_v60 = vmax.f32 %v390_v56, 0.0  ;;  %v658_v62 = vpop.f32.mrb[6].mxu0 }
  0xf5   : > { %v460_v61 = vmax.f32 %v430_v57, 0.0  ;;  %v670_v63 = vpop.f32.mrb[6].mxu1  ;;  %470 = vst.msk [vmem:[%s843_s10 + $0x28] sm:$0xff] %vm464_vm1, %v453_v58  ;;  %v405_v0 = vadd.f32 %v658_v62, %v594_v25  ;;  %v399_v2 = vpop.f32.mrb[7].mxu0 }
  0xf6   : > { %478 = vst.msk [vmem:[%s843_s10 + $0x68] sm:$0xff] %vm464_vm1, %v461_v59  ;;  %v445_v1 = vadd.f32 %v670_v63, %v594_v25  ;;  %v439_v3 = vpop.f32.mrb[7].mxu1  ;;  %469 = vst.msk [vmem:[%s843_s10 + $0x20] sm:$0xff] %vm464_vm1, %v452_v60  ;;  %v400_v4 = vadd.f32 %v594_v25, %v399_v2 }
  0xf7   : > { %477 = vst.msk [vmem:[%s843_s10 + $0x60] sm:$0xff] %vm464_vm1, %v460_v61  ;;  %v440_v5 = vadd.f32 %v594_v25, %v439_v3  ;;  %v455_v6 = vmax.f32 %v405_v0, 0.0 }
  0xf8   : > { %v463_v7 = vmax.f32 %v445_v1, 0.0  ;;  %v454_v8 = vmax.f32 %v400_v4, 0.0 }
  0xf9   : > { %v462_v9 = vmax.f32 %v440_v5, 0.0  ;;  %472 = vst.msk [vmem:[%s843_s10 + $0x38] sm:$0xff] %vm464_vm1, %v455_v6 }
  0xfa   : > { %480 = vst.msk [vmem:[%s843_s10 + $0x78] sm:$0xff] %vm464_vm1, %v463_v7  ;;  %471 = vst.msk [vmem:[%s843_s10 + $0x30] sm:$0xff] %vm464_vm1, %v454_v8 }
  0xfb   : > { %479 = vst.msk [vmem:[%s843_s10 + $0x70] sm:$0xff] %vm464_vm1, %v462_v9 }
  0xfc PF: > { %s13_s14 = sadd.s32 1, %s735_s14   ;;  %s890_s12 = smov %s731_s13 }
  0xfd   : > { %p10_p5 = scmp.ge.s32.totalorder %s13_s14, 18   ;;  %s891_s13 = smov %s893_s15 }
  0xff   :  { %12 = sbr.rel (!%p10_p5) target bundleno = 2 (0x2), region = 68 }

</bundles_post_ra>
